<compile_context>
chip_gen: v7x
topology: tpu7x:2x2x1
jax: 0.10.0
libtpu: 0.0.40
codegen_flags: <defaults>
</compile_context>

<pallas_src>
import math

import jax
import jax.numpy as jnp
from jax.experimental import pallas as pl
from jax.experimental.pallas import tpu as pltpu

D_K = 64
D_V = 64
MASK_FILL = -1e9


def _sdpa_kernel(q_ref, k_ref, v_ref, mask_ref, ctx_ref, attn_ref):
    # q_ref: (HB, TQ, d_k), k_ref: (HB, Lk, d_k), v_ref: (HB, Lk, d_v),
    # mask_ref: (HB, TQ, Lk) int8.  Batch dim is squeezed by the BlockSpec.
    q = q_ref[...]
    k = k_ref[...]
    v = v_ref[...]

    # Fold 1/sqrt(d_k) into Q: d_k multiplies per row instead of len_k.
    q = q * jnp.asarray(1.0 / math.sqrt(D_K), dtype=q.dtype)

    # scores = Q @ K^T: contraction over d_k expressed directly (no explicit
    # transpose), f32 accumulation on the MXU.
    scores = jnp.einsum("hqd,hkd->hqk", q, k, preferred_element_type=jnp.float32)

    # masked_fill_(attn_mask, -1e9).  The mask crosses HBM as int8 and is
    # widened on the VPU here.
    mask = mask_ref[...].astype(jnp.float32)
    scores = jnp.where(mask != 0.0, jnp.float32(MASK_FILL), scores)

    # Numerically stable softmax along the key axis, in f32.
    m = jnp.max(scores, axis=-1, keepdims=True)
    e = jnp.exp(scores - m)
    denom = jnp.sum(e, axis=-1, keepdims=True)
    inv = pl.reciprocal(denom, approx=True)      # EUP slot, essentially free
    inv = inv * (2.0 - denom * inv)              # one Newton step -> ~f32 exact
    attn = e * inv

    # context = attn @ V (probabilities fed to the MXU in V's dtype).
    ctx = jnp.einsum("hqk,hkd->hqd", attn.astype(v.dtype), v,
                     preferred_element_type=jnp.float32)

    attn_ref[...] = attn.astype(attn_ref.dtype)
    ctx_ref[...] = ctx.astype(ctx_ref.dtype)


def _pick_q_tile(len_q, cap=256):
    """Largest query tile <= cap that is a multiple of 8 and divides len_q
    (falls back to the full axis for small / awkward len_q)."""
    if len_q <= cap:
        return len_q
    for tq in range(cap, 7, -1):
        if len_q % tq == 0 and tq % 8 == 0:
            return tq
    return len_q


def _pick_head_block(n_heads, cap=4):
    """Largest head block <= cap that divides n_heads."""
    for hb in range(min(cap, n_heads), 0, -1):
        if n_heads % hb == 0:
            return hb
    return 1


def scaled_dot_product_attention(Q, K, V, attn_mask):
    """Q:[B,H,Lq,dk] K:[B,H,Lk,dk] V:[B,H,Lk,dv] attn_mask:[B,H,Lq,Lk].

    Returns (context [B,H,Lq,dv], attn [B,H,Lq,Lk]) like the torch module.
    """
    B, H, Lq, dk = Q.shape
    Lk = K.shape[2]
    dv = V.shape[3]
    assert dk == D_K and dv == D_V

    out_dtype = Q.dtype

    # Mask crosses HBM as int8 (nonzero == masked position).
    mask_i8 = attn_mask.astype(jnp.int8)

    TQ = _pick_q_tile(Lq)
    HB = _pick_head_block(H)
    grid = (B, H // HB, Lq // TQ)

    # index maps: (batch, head-block, q-block) -> block indices.
    q_spec = pl.BlockSpec((None, HB, TQ, dk), lambda b, h, i: (b, h, i, 0))
    k_spec = pl.BlockSpec((None, HB, Lk, dk), lambda b, h, i: (b, h, 0, 0))
    v_spec = pl.BlockSpec((None, HB, Lk, dv), lambda b, h, i: (b, h, 0, 0))
    m_spec = pl.BlockSpec((None, HB, TQ, Lk), lambda b, h, i: (b, h, i, 0))
    ctx_spec = pl.BlockSpec((None, HB, TQ, dv), lambda b, h, i: (b, h, i, 0))
    attn_spec = pl.BlockSpec((None, HB, TQ, Lk), lambda b, h, i: (b, h, i, 0))

    # Per-step VMEM budget: double-buffered I/O tiles + f32 intermediates.
    in_b = jnp.dtype(Q.dtype).itemsize
    out_b = jnp.dtype(out_dtype).itemsize
    est = (2 * (HB * TQ * dk + HB * Lk * dk + HB * Lk * dv) * in_b
           + 2 * HB * TQ * Lk * 1
           + 2 * (HB * TQ * dv + HB * TQ * Lk) * out_b
           + 4 * HB * TQ * Lk * 4)
    vmem_limit = int(min(100 * 2**20, max(32 * 2**20, 2 * est)))

    # TODO(synk): a lane-dense [B, Lq, H*dv] ctx layout (last dim >= 128) would
    # avoid masked partial stores, but would change the module's output layout.
    context, attn = pl.pallas_call(
        _sdpa_kernel,
        out_shape=(
            jax.ShapeDtypeStruct((B, H, Lq, dv), out_dtype),
            jax.ShapeDtypeStruct((B, H, Lq, Lk), out_dtype),
        ),
        grid_spec=pltpu.PrefetchScalarGridSpec(
            num_scalar_prefetch=0,
            grid=grid,
            in_specs=[q_spec, k_spec, v_spec, m_spec],
            out_specs=[ctx_spec, attn_spec],
        ),
        compiler_params=pltpu.CompilerParams(
            dimension_semantics=("parallel", "parallel", "parallel"),
            vmem_limit_bytes=vmem_limit,
        ),
    )(Q, K, V, mask_i8)
    return context, attn


def _reference(Q, K, V, attn_mask):
    scores = jnp.einsum("bhqd,bhkd->bhqk", Q, K) / math.sqrt(D_K)
    scores = jnp.where(attn_mask, MASK_FILL, scores)
    attn = jax.nn.softmax(scores, axis=-1)
    context = jnp.einsum("bhqk,bhkd->bhqd", attn, V)
    return context, attn


if __name__ == "__main__":
    key = jax.random.PRNGKey(0)
    kq, kk, kv = jax.random.split(key, 3)

    B, H, Lq, Lk = 2, 4, 8, 8
    Q = jax.random.normal(kq, (B, H, Lq, D_K), dtype=jnp.float32)
    K = jax.random.normal(kk, (B, H, Lk, D_K), dtype=jnp.float32)
    V = jax.random.normal(kv, (B, H, Lk, D_V), dtype=jnp.float32)

    # Causal-style boolean mask (True = masked), matching attn_mask semantics.
    attn_mask = jnp.triu(jnp.ones((Lq, Lk), dtype=jnp.bool_), k=1)
    attn_mask = jnp.broadcast_to(attn_mask, (B, H, Lq, Lk))

    context, attn = scaled_dot_product_attention(Q, K, V, attn_mask)
    context = jax.block_until_ready(context)
    attn = jax.block_until_ready(attn)

    ref_ctx, ref_attn = _reference(Q, K, V, attn_mask)
    assert jnp.allclose(context, ref_ctx, atol=1e-4, rtol=1e-4)
    assert jnp.allclose(attn, ref_attn, atol=1e-4, rtol=1e-4)

    print("KERNEL_OK")
</pallas_src>

<mosaic_0001>
module attributes {stable_mosaic.version = 11 : i64} {
  func.func @_sdpa_kernel(%arg0: i32, %arg1: i32, %arg2: i32, %arg3: memref<1x4x8x64xf32, #tpu.memory_space<vmem>>, %arg4: memref<1x4x8x64xf32, #tpu.memory_space<vmem>>, %arg5: memref<1x4x8x64xf32, #tpu.memory_space<vmem>>, %arg6: memref<1x4x8x8xi8, #tpu.memory_space<vmem>>, %arg7: memref<1x4x8x64xf32, #tpu.memory_space<vmem>>, %arg8: memref<1x4x8x8xf32, #tpu.memory_space<vmem>>) attributes {dimension_semantics = [#tpu.dimension_semantics<parallel>, #tpu.dimension_semantics<parallel>, #tpu.dimension_semantics<parallel>], iteration_bounds = array<i64: 2, 1, 1>, scalar_prefetch = 0 : i64, scratch_operands = 0 : i64, tpu.core_type = #tpu.core_type<tc>, window_params = [{transform_indices = @transform_0, window_bounds = array<i64: 1, 4, 8, 64>}, {transform_indices = @transform_1, window_bounds = array<i64: 1, 4, 8, 64>}, {transform_indices = @transform_2, window_bounds = array<i64: 1, 4, 8, 64>}, {transform_indices = @transform_3, window_bounds = array<i64: 1, 4, 8, 8>}, {transform_indices = @transform_4, window_bounds = array<i64: 1, 4, 8, 64>}, {transform_indices = @transform_5, window_bounds = array<i64: 1, 4, 8, 8>}]} {
    %c0 = arith.constant 0 : index
    %c0_0 = arith.constant 0 : index
    %c0_1 = arith.constant 0 : index
    %c0_2 = arith.constant 0 : index
    %0 = vector.load %arg3[%c0, %c0_0, %c0_1, %c0_2] : memref<1x4x8x64xf32, #tpu.memory_space<vmem>>, vector<1x4x8x64xf32>
    %1 = vector.shape_cast %0 : vector<1x4x8x64xf32> to vector<4x8x64xf32>
    %c0_3 = arith.constant 0 : index
    %c0_4 = arith.constant 0 : index
    %c0_5 = arith.constant 0 : index
    %c0_6 = arith.constant 0 : index
    %2 = vector.load %arg4[%c0_3, %c0_4, %c0_5, %c0_6] : memref<1x4x8x64xf32, #tpu.memory_space<vmem>>, vector<1x4x8x64xf32>
    %3 = vector.shape_cast %2 : vector<1x4x8x64xf32> to vector<4x8x64xf32>
    %c0_7 = arith.constant 0 : index
    %c0_8 = arith.constant 0 : index
    %c0_9 = arith.constant 0 : index
    %c0_10 = arith.constant 0 : index
    %4 = vector.load %arg5[%c0_7, %c0_8, %c0_9, %c0_10] : memref<1x4x8x64xf32, #tpu.memory_space<vmem>>, vector<1x4x8x64xf32>
    %5 = vector.shape_cast %4 : vector<1x4x8x64xf32> to vector<4x8x64xf32>
    %cst = arith.constant 1.250000e-01 : f32
    %6 = vector.broadcast %cst : f32 to vector<4x8x64xf32>
    %7 = arith.mulf %1, %6 : vector<4x8x64xf32>
    "tpu.trace_start"() <{level = 10 : i32, message = "hqd,hkd->hqk"}> : () -> ()
    %cst_11 = arith.constant dense<0.000000e+00> : vector<4x8x8xf32>
    %8 = tpu.matmul %7, %3, %cst_11 {dimension_numbers = #tpu.dot_dimension_numbers<[2], [2], [1], [1], [0, 0, 0, 1, 1, 1], [0], [0]>} : vector<4x8x64xf32>, vector<4x8x64xf32>, vector<4x8x8xf32> -> vector<4x8x8xf32>
    "tpu.trace_stop"() : () -> ()
    %c0_12 = arith.constant 0 : index
    %c0_13 = arith.constant 0 : index
    %c0_14 = arith.constant 0 : index
    %c0_15 = arith.constant 0 : index
    %9 = vector.load %arg6[%c0_12, %c0_13, %c0_14, %c0_15] : memref<1x4x8x8xi8, #tpu.memory_space<vmem>>, vector<1x4x8x8xi8>
    %10 = vector.shape_cast %9 : vector<1x4x8x8xi8> to vector<4x8x8xi8>
    %11 = arith.sitofp %10 : vector<4x8x8xi8> to vector<4x8x8xf32>
    %cst_16 = arith.constant 0.000000e+00 : f32
    %12 = vector.broadcast %cst_16 : f32 to vector<4x8x8xf32>
    %13 = arith.cmpf one, %11, %12 : vector<4x8x8xf32>
    %cst_17 = arith.constant -1.000000e+09 : f32
    %14 = vector.broadcast %cst_17 : f32 to vector<4x8x8xf32>
    %15 = arith.select %13, %14, %8 : vector<4x8x8xi1>, vector<4x8x8xf32>
    %cst_18 = arith.constant dense<0xFF800000> : vector<4x8xf32>
    %16 = vector.multi_reduction <maximumf>, %15, %cst_18 [2] : vector<4x8x8xf32> to vector<4x8xf32>
    %17 = vector.shape_cast %16 : vector<4x8xf32> to vector<4x8x1xf32>
    %18 = vector.broadcast %17 : vector<4x8x1xf32> to vector<4x8x8xf32>
    %19 = arith.subf %15, %18 : vector<4x8x8xf32>
    %20 = math.exp %19 : vector<4x8x8xf32>
    %cst_19 = arith.constant dense<0.000000e+00> : vector<4x8xf32>
    %21 = vector.multi_reduction <add>, %20, %cst_19 [2] : vector<4x8x8xf32> to vector<4x8xf32>
    %22 = vector.shape_cast %21 : vector<4x8xf32> to vector<4x8x1xf32>
    %23 = tpu.reciprocal %22 {approx = true} : vector<4x8x1xf32> -> vector<4x8x1xf32>
    %24 = arith.mulf %22, %23 : vector<4x8x1xf32>
    %cst_20 = arith.constant 2.000000e+00 : f32
    %25 = vector.broadcast %cst_20 : f32 to vector<4x8x1xf32>
    %26 = arith.subf %25, %24 : vector<4x8x1xf32>
    %27 = arith.mulf %23, %26 : vector<4x8x1xf32>
    %28 = vector.broadcast %27 : vector<4x8x1xf32> to vector<4x8x8xf32>
    %29 = arith.mulf %20, %28 : vector<4x8x8xf32>
    "tpu.trace_start"() <{level = 10 : i32, message = "hqk,hkd->hqd"}> : () -> ()
    %cst_21 = arith.constant dense<0.000000e+00> : vector<4x8x64xf32>
    %30 = tpu.matmul %29, %5, %cst_21 {dimension_numbers = #tpu.dot_dimension_numbers<[2], [1], [1], [2], [0, 0, 0, 1, 1, 2], [0], [0]>} : vector<4x8x8xf32>, vector<4x8x64xf32>, vector<4x8x64xf32> -> vector<4x8x64xf32>
    "tpu.trace_stop"() : () -> ()
    %c0_22 = arith.constant 0 : index
    %c0_23 = arith.constant 0 : index
    %c0_24 = arith.constant 0 : index
    %c0_25 = arith.constant 0 : index
    %31 = vector.load %arg8[%c0_22, %c0_23, %c0_24, %c0_25] : memref<1x4x8x8xf32, #tpu.memory_space<vmem>>, vector<1x4x8x8xf32>
    %32 = vector.shape_cast %31 : vector<1x4x8x8xf32> to vector<4x8x8xf32>
    %33 = vector.shape_cast %29 : vector<4x8x8xf32> to vector<1x4x8x8xf32>
    tpu.vector_store %arg8[%c0_22, %c0_23, %c0_24, %c0_25], %33 {strides = array<i32>} : memref<1x4x8x8xf32, #tpu.memory_space<vmem>>, vector<1x4x8x8xf32>,
    %c0_26 = arith.constant 0 : index
    %c0_27 = arith.constant 0 : index
    %c0_28 = arith.constant 0 : index
    %c0_29 = arith.constant 0 : index
    %34 = vector.load %arg7[%c0_26, %c0_27, %c0_28, %c0_29] : memref<1x4x8x64xf32, #tpu.memory_space<vmem>>, vector<1x4x8x64xf32>
    %35 = vector.shape_cast %34 : vector<1x4x8x64xf32> to vector<4x8x64xf32>
    %36 = vector.shape_cast %30 : vector<4x8x64xf32> to vector<1x4x8x64xf32>
    tpu.vector_store %arg7[%c0_26, %c0_27, %c0_28, %c0_29], %36 {strides = array<i32>} : memref<1x4x8x64xf32, #tpu.memory_space<vmem>>, vector<1x4x8x64xf32>,
    return
  }
  func.func @transform_0(%arg0: i32, %arg1: i32, %arg2: i32) -> (i32, i32, i32, i32) {
    %c0_i32 = arith.constant 0 : i32
    %c0_i32_0 = arith.constant 0 : i32
    return %arg0, %arg1, %arg2, %c0_i32 : i32, i32, i32, i32
  }
  func.func @transform_1(%arg0: i32, %arg1: i32, %arg2: i32) -> (i32, i32, i32, i32) {
    %c0_i32 = arith.constant 0 : i32
    %c0_i32_0 = arith.constant 0 : i32
    %c0_i32_1 = arith.constant 0 : i32
    return %arg0, %arg1, %c0_i32, %c0_i32_0 : i32, i32, i32, i32
  }
  func.func @transform_2(%arg0: i32, %arg1: i32, %arg2: i32) -> (i32, i32, i32, i32) {
    %c0_i32 = arith.constant 0 : i32
    %c0_i32_0 = arith.constant 0 : i32
    %c0_i32_1 = arith.constant 0 : i32
    return %arg0, %arg1, %c0_i32, %c0_i32_0 : i32, i32, i32, i32
  }
  func.func @transform_3(%arg0: i32, %arg1: i32, %arg2: i32) -> (i32, i32, i32, i32) {
    %c0_i32 = arith.constant 0 : i32
    %c0_i32_0 = arith.constant 0 : i32
    return %arg0, %arg1, %arg2, %c0_i32 : i32, i32, i32, i32
  }
  func.func @transform_4(%arg0: i32, %arg1: i32, %arg2: i32) -> (i32, i32, i32, i32) {
    %c0_i32 = arith.constant 0 : i32
    %c0_i32_0 = arith.constant 0 : i32
    return %arg0, %arg1, %arg2, %c0_i32 : i32, i32, i32, i32
  }
  func.func @transform_5(%arg0: i32, %arg1: i32, %arg2: i32) -> (i32, i32, i32, i32) {
    %c0_i32 = arith.constant 0 : i32
    %c0_i32_0 = arith.constant 0 : i32
    return %arg0, %arg1, %arg2, %c0_i32 : i32, i32, i32, i32
  }
}

</mosaic_0001>

<bundles_post_ra>
// kernel: tpu_custom_call.1
= control target key start
LH: loop header
LB: loop body
LE: loop exit
PB: predicated region body
PF: predicated region fallthrough
CT: control target
= control target key end

     0   :  { %s2310_s0 = inlined_call_operand.hbm [shape: f32[2,4,8,64], index: 0, kind: input, shape index: {}]   ;;  %s2311_s1 = inlined_call_operand.hbm [shape: f32[2,4,8,64], index: 1, kind: input, shape index: {}]   ;;  %s2312_s2 = inlined_call_operand.hbm [shape: f32[2,4,8,64], index: 2, kind: input, shape index: {}]   ;;  %s2313_s3 = inlined_call_operand.hbm [shape: s8[2,4,8,8], index: 3, kind: input, shape index: {}]   ;;  %s2314_s4 = inlined_call_operand.hbm [shape: f32[2,4,8,64], index: 4, kind: output, shape index: {0}]   ;;  %s2315_s5 = inlined_call_operand.hbm [shape: f32[2,4,8,8], index: 5, kind: output, shape index: {1}]  }
   0x1   :  { %2328 = sst [smem:[#allocation24_spill]] %s2310_s0 }
   0x2   :  { %2329 = sst [smem:[#allocation25_spill]] %s2311_s1 }
   0x3   :  { %11 = vsyncpa [#allocation3], 0 }
   0x4   :  { %13 = vsyncpa [#allocation3 + $0x1], 0 }
   0x5   :  { %14 = vsyncpa [#allocation6], 0 }
   0x6   :  { %16 = vsyncpa [#allocation6 + $0x1], 0 }
   0x7   :  { %17 = vsyncpa [#allocation9], 0 }
   0x8   :  { %19 = vsyncpa [#allocation9 + $0x1], 0 }
   0x9   :  { %20 = vsyncpa [#allocation4], 0 }
   0xa   :  { %22 = vsyncpa [#allocation4 + $0x1], 0 }
   0xb   :  { %23 = vsyncpa [#allocation12], 0 }
   0xc   :  { %25 = vsyncpa [#allocation12 + $0x1], 0  ;;  %s1877_s18 = smov 0   ;;  %s1879_s19 = smov 0  }
   0xd   :  { %s1881_s20 = smov 0   ;;  %s1883_s21 = smov 0  }
   0xe   :  { %s1885_s22 = smov 0   ;;  %s1887_s23 = smov 0  }
   0xf LB: > { %2330 = sst [smem:[#allocation18_spill]] %s1811_s18  ;;  %s1908_s24 = sadd.s32 4294967295, %s1831_s23   ;;  %s1831_s23 = sphi %s1887_s23, %s31_s23   ;;  %s1827_s22 = sphi %s1885_s22, %s2363_s22   ;;  %s1823_s21 = sphi %s1883_s21, %s2362_s21   ;;  %s1819_s20 = sphi %s1881_s20, %s2358_s20   ;;  %s1815_s19 = sphi %s1879_s19, %s2361_s19   ;;  %s1811_s18 = sphi %s1877_s18, %s2360_s18  }
  0x10   : > { %2331 = sst [smem:[#allocation19_spill]] %s1819_s20  ;;  %s1370_s25 = sadd.s32 4294967294, %s1831_s23  }
  0x11   : > { %2332 = sst [smem:[#allocation20_spill]] %s1831_s23  ;;  %s50_s26 = sadd.s32 1, %s1827_s22 }
  0x12   : > { %s61_s27 = sadd.s32 1, %s1819_s20  ;;  %p52_p0 = scmp.ge.s32.totalorder %s50_s26, 2 }
  0x13   : > { %p68_p1 = scmp.ne.s32.totalorder %s1819_s20, %s1815_s19  ;;  %p69_p2 = scmp.eq.s32.totalorder %s1831_s23, 0 }
  0x14   : > { %p74_p3 = scmp.ne.s32.totalorder %s1815_s19, %s1811_s18  ;;  %s2365_s26 = smov (%p52_p0, %s50_s26), 0 }
  0x15   : > { %2333 = sst [smem:[#allocation21_spill]] %s2365_s26  ;;  %p1920_p4 = por %p69_p2, %p68_p1 }
  0x16   : > { %p75_p5 = scmp.eq.s32.totalorder %s1908_s24, 0  ;;  %s54_s29 = ssub.s32 %s1827_s22, %s2365_s26 }
  0x17   : > { %p188_p6 = scmp.eq.s32.totalorder %s1908_s24, 1  ;;  %p59_p7 = scmp.eq.s32.totalorder %s54_s29, 0 }
  0x18   : > { %p1928_p8 = por %p75_p5, %p74_p3  ;;  %p194_p10 = scmp.eq.s32.totalorder %s1370_s25, 1 }
  0x19   : > { %p1932_p9 = por %p188_p6, %p68_p1  ;;  %p1515_p13 = scmp.lt.s32.totalorder %s1831_s23, 2 }
  0x1a   : > { %s2335_s30 = scalar_select %p1928_p8, 1, 0 }
  0x1b   : > { %s2336_s6 = scalar_select %p1932_p9, 1, 0 }
  0x1c   : > { %s1937_s7 = scalar_select %p59_p7, %s1819_s20, %s61_s27  }
  0x1d   : > { %p1939_p11 = por %p194_p10, %p74_p3  ;;  %s1946_s9 = sand.u32 1, %s1819_s20  }
  0x1e   : > { %2337 = sst [smem:[#allocation22_spill]] %s1937_s7  ;;  %s1949_s10 = sshll.u32 %s1946_s9, 5 }
  0x1f   : > { %s2338_s8 = scalar_select %p1939_p11, 1, 0 }
  0x20   : > { %s1952_s11 = sshll.u32 %s1827_s22, 9  ;;  %p1956_p0 = pnand %p1515_p13, %p1920_p4 }
  0x21   : > { %2339 = sst [smem:[#allocation23_spill]] %s2338_s8  ;;  %s268_s13 = sand.u32 1, %s1831_s23  }
  0x22   : > { %s2341_s1 = sld [smem:[#allocation25_spill]]  ;;  %s272_s17 = scalar_lea.vmem [#allocation5], %s1949_s10 }
  0x23   : > { %s281_s25 = sshll.u32 %s272_s17, 4  ;;  %s1972_s27 = scalar_lea.sflag [#allocation6], %s268_s13  ;;  %s1969_s25 = int_to_ptr.vmem [resolvable:$true] %s281_s25 }
  0x24   : > { %p1978_p4 = pneg %p1956_p0 }
  0x28   : > { %s1965_s16 = scalar_lea.hbm %s2341_s1, %s1952_s11  ;;  %s1594_s17 = scalar_lea.hbm %s2341_s1, 1024 }
  0x29   : > { %s1589_s28 = scalar_lea.hbm %s1965_s16, 512  ;;  %p1595_p7 = scmp.lt.u32.totalorder %s1965_s16, %s2341_s1 }
  0x2a   : > { %p1590_p3 = scmp.ne.s32.totalorder %s1965_s16, %s1589_s28  ;;  %p1596_p10 = scmp.lt.u32.totalorder %s1594_s17, %s1589_s28 }
  0x2b   : > { %p1598_p12 = scmp.lt.u32.totalorder %s1589_s28, %s1965_s16 }
  0x2c   : > { %p1592_p5 = pnand %p1978_p4, %p1590_p3  ;;  %p1597_p13 = por %p1596_p10, %p1595_p7 }
  0x2e   : > { %p1593_p6 = pneg %p1592_p5  ;;  %p1599_p1 = por %p1598_p12, %p1597_p13 }
  0x30   : > { %p1600_p2 = pnand %p1599_p1, %p1593_p6 }
  0x32   : > { %1603 = shalt.err (!%p1600_p2)
}
  0x33   : > { %s1604_s13 = scalar_lea.vmem %s1969_s25, 512  ;;  %s1833_s14 = smov [#allocation5]  }
  0x34   : > { %p1605_p3 = scmp.ne.s32.totalorder %s1969_s25, %s1604_s13  ;;  %s1609_s15 = sshll.u32 %s1833_s14, 4  ;;  %s1610_s15 = int_to_ptr.vmem [resolvable:$false] %s1609_s15 }
  0x35   : > { %s1611_s26 = scalar_lea.vmem %s1610_s15, 1024  ;;  %p1612_p9 = scmp.lt.s32.totalorder %s1969_s25, %s1610_s15 }
  0x36   : > { %p1607_p5 = pnand %p1605_p3, %p1978_p4  ;;  %p1613_p8 = scmp.lt.s32.totalorder %s1611_s26, %s1604_s13 }
  0x38   : > { %p1608_p11 = pneg %p1607_p5  ;;  %p1614_p7 = por %p1613_p8, %p1612_p9 }
  0x3a   : > { %p1615_p10 = pnand %p1614_p7, %p1608_p11 }
  0x3c   : > { %1618 = shalt.err (!%p1615_p10)
}
  0x3d   : > { %s2319_s7 = smov 128   ;;  %s2321_s28 = smov 8  }
  0x3e   : > { %1501 = dma.hbm_to_vmem [thread:$0]  (!%p1956_p0), %s1965_s16, 512, %s1969_s25, %s1972_s27, %s2319_s7, %s2319_s7, %s2321_s28  }
  0x3f   : > { %p2343_p8 = scmp.lt.s32.totalorder %s1831_s23, 3  ;;  %p2344_p9 = scmp.ge.s32.totalorder %s1831_s23, 1 }
  0x40   : > { %s2346_s0 = sld [smem:[#allocation24_spill]]  ;;  %s248_s26 = scalar_lea.vmem [#allocation2], %s1949_s10 }
  0x41   : > { %p2009_p11 = pnand %p2344_p9, %p2343_p8  ;;  %s258_s1 = sshll.u32 %s248_s26, 4  ;;  %s2020_s1 = int_to_ptr.vmem [resolvable:$true] %s258_s1 }
  0x42   : > { %s2026_s7 = scalar_lea.hbm %s2312_s2, %s1952_s11  ;;  %s245_s28 = scalar_lea.sflag [#allocation3], %s1946_s9 }
  0x43   : > { %s2345_s17 = scalar_select %p2009_p11, 1, 0 }
  0x46   : > { %s2017_s15 = scalar_lea.hbm %s2346_s0, %s1952_s11  ;;  %s1624_s23 = scalar_lea.hbm %s2346_s0, 1024 }
  0x47   : > { %s1619_s20 = scalar_lea.hbm %s2017_s15, 512  ;;  %p1625_p6 = scmp.lt.u32.totalorder %s2017_s15, %s2346_s0 }
  0x48   : > { %p1620_p12 = scmp.ne.s32.totalorder %s2017_s15, %s1619_s20  ;;  %p1626_p13 = scmp.lt.u32.totalorder %s1624_s23, %s1619_s20 }
  0x49   : > { %p1628_p5 = scmp.lt.u32.totalorder %s1619_s20, %s2017_s15 }
  0x4a   : > { %p1622_p1 = pnand %p1620_p12, %p1978_p4  ;;  %p1627_p3 = por %p1626_p13, %p1625_p6 }
  0x4c   : > { %p1623_p2 = pneg %p1622_p1  ;;  %p1629_p7 = por %p1628_p5, %p1627_p3 }
  0x4e   : > { %p1630_p10 = pnand %p1629_p7, %p1623_p2 }
  0x50   : > { %1633 = shalt.err (!%p1630_p10)
}
  0x51   : > { %s1634_s11 = scalar_lea.vmem %s2020_s1, 512  ;;  %s1836_s26 = smov [#allocation2]  }
  0x52   : > { %p1635_p8 = scmp.ne.s32.totalorder %s2020_s1, %s1634_s11  ;;  %s1639_s16 = sshll.u32 %s1836_s26, 4  ;;  %s1640_s16 = int_to_ptr.vmem [resolvable:$false] %s1639_s16 }
  0x53   : > { %s1641_s18 = scalar_lea.vmem %s1640_s16, 1024  ;;  %p1642_p1 = scmp.lt.s32.totalorder %s2020_s1, %s1640_s16 }
  0x54   : > { %p1637_p9 = pnand %p1635_p8, %p1978_p4  ;;  %p1643_p11 = scmp.lt.s32.totalorder %s1641_s18, %s1634_s11 }
  0x56   : > { %p1638_p12 = pneg %p1637_p9  ;;  %p1644_p6 = por %p1643_p11, %p1642_p1 }
  0x58   : > { %p1645_p13 = pnand %p1644_p6, %p1638_p12 }
  0x5a   : > { %1648 = shalt.err (!%p1645_p13)
}
  0x5b   : > { %s2347_s20 = smov 8   ;;  %s2348_s23 = smov 128  }
  0x5c   : > { %1498 = dma.hbm_to_vmem [thread:$0]  (!%p1956_p0), %s2017_s15, 512, %s2020_s1, %s245_s28, %s2348_s23, %s2348_s23, %s2347_s20  }
  0x5d   : > { %s295_s8 = scalar_lea.vmem [#allocation7], %s1949_s10  ;;  %s1382_s13 = sshll.u32 %s1946_s9, 3 }
  0x5e   : > { %s304_s25 = sshll.u32 %s295_s8, 4  ;;  %s1649_s14 = scalar_lea.hbm %s2026_s7, 512  ;;  %s2056_s25 = int_to_ptr.vmem [resolvable:$true] %s304_s25 }
  0x5f   : > { %p1650_p11 = scmp.ne.s32.totalorder %s2026_s7, %s1649_s14  ;;  %s1654_s16 = scalar_lea.hbm %s2312_s2, 1024 }
  0x60   : > { %p1655_p5 = scmp.lt.u32.totalorder %s2026_s7, %s2312_s2  ;;  %p1656_p7 = scmp.lt.u32.totalorder %s1654_s16, %s1649_s14 }
  0x61   : > { %p1652_p2 = pnand %p1650_p11, %p1978_p4  ;;  %p1658_p8 = scmp.lt.u32.totalorder %s1649_s14, %s2026_s7 }
  0x62   : > { %p1657_p10 = por %p1656_p7, %p1655_p5 }
  0x63   : > { %p1653_p3 = pneg %p1652_p2 }
  0x64   : > { %p1659_p9 = por %p1658_p8, %p1657_p10 }
  0x66   : > { %p1660_p12 = pnand %p1659_p9, %p1653_p3 }
  0x68   : > { %1663 = shalt.err (!%p1660_p12)
}
  0x69   : > { %s1664_s1 = scalar_lea.vmem %s2056_s25, 512  ;;  %s1837_s10 = smov [#allocation7]  }
  0x6a   : > { %p1665_p1 = scmp.ne.s32.totalorder %s2056_s25, %s1664_s1  ;;  %s1669_s28 = sshll.u32 %s1837_s10, 4  ;;  %s1670_s28 = int_to_ptr.vmem [resolvable:$false] %s1669_s28 }
  0x6b   : > { %s1671_s0 = scalar_lea.vmem %s1670_s28, 1024  ;;  %p1672_p11 = scmp.lt.s32.totalorder %s2056_s25, %s1670_s28 }
  0x6c   : > { %p1667_p6 = pnand %p1665_p1, %p1978_p4  ;;  %p1673_p2 = scmp.lt.s32.totalorder %s1671_s0, %s1664_s1 }
  0x6e   : > { %p1668_p13 = pneg %p1667_p6  ;;  %p1674_p5 = por %p1673_p2, %p1672_p11 }
  0x70   : > { %p1675_p7 = pnand %p1674_p5, %p1668_p13 }
  0x72   : > { %1678 = shalt.err (!%p1675_p7)
}
  0x73   : > { %1504 = dma.hbm_to_vmem [thread:$0]  (!%p1956_p0), %s2026_s7, 512, %s2056_s25, %s1972_s27, %s2348_s23, %s2348_s23, %s2347_s20  }
  0x74   : > { %s1415_s15 = sshll.u32 %s1827_s22, 7  ;;  %s318_s26 = scalar_lea.vmem [#allocation8], %s1382_s13 }
  0x75   : > { %s2088_s11 = scalar_lea.hbm %s2313_s3, %s1415_s15  ;;  %s328_s16 = sshll.u32 %s318_s26, 4  ;;  %s2092_s16 = int_to_ptr.vmem [resolvable:$true] %s328_s16 }
  0x76   : > { %s315_s18 = scalar_lea.sflag [#allocation9], %s1946_s9  ;;  %s1679_s1 = scalar_lea.hbm %s2088_s11, 128 }
  0x77   : > { %p1680_p3 = scmp.ne.s32.totalorder %s2088_s11, %s1679_s1  ;;  %s1684_s20 = scalar_lea.hbm %s2313_s3, 256 }
  0x78   : > { %p1685_p9 = scmp.lt.u32.totalorder %s2088_s11, %s2313_s3  ;;  %p1686_p12 = scmp.lt.u32.totalorder %s1684_s20, %s1679_s1 }
  0x79   : > { %p1682_p10 = pnand %p1680_p3, %p1978_p4  ;;  %p1688_p6 = scmp.lt.u32.totalorder %s1679_s1, %s2088_s11 }
  0x7a   : > { %p1687_p1 = por %p1686_p12, %p1685_p9 }
  0x7b   : > { %p1683_p8 = pneg %p1682_p10 }
  0x7c   : > { %p1689_p13 = por %p1688_p6, %p1687_p1 }
  0x7e   : > { %p1690_p11 = pnand %p1689_p13, %p1683_p8 }
  0x80   : > { %1693 = shalt.err (!%p1690_p11)
}
  0x81   : > { %s1694_s13 = scalar_lea.vmem %s2092_s16, 128  ;;  %s1838_s10 = smov [#allocation8]  }
  0x82   : > { %p1695_p2 = scmp.ne.s32.totalorder %s2092_s16, %s1694_s13  ;;  %s1699_s28 = sshll.u32 %s1838_s10, 4  ;;  %s1700_s28 = int_to_ptr.vmem [resolvable:$false] %s1699_s28 }
  0x83   : > { %s1701_s0 = scalar_lea.vmem %s1700_s28, 256  ;;  %p1702_p3 = scmp.lt.s32.totalorder %s2092_s16, %s1700_s28 }
  0x84   : > { %p1697_p5 = pnand %p1695_p2, %p1978_p4  ;;  %p1703_p10 = scmp.lt.s32.totalorder %s1701_s0, %s1694_s13 }
  0x86   : > { %p1698_p7 = pneg %p1697_p5  ;;  %p1704_p9 = por %p1703_p10, %p1702_p3 }
  0x88   : > { %p1705_p12 = pnand %p1704_p9, %p1698_p7 }
  0x8a   : > { %1708 = shalt.err (!%p1705_p12)
}
  0x8b   : > { %s1839_s15 = smov 32   ;;  %s1840_s8 = smov 2  }
  0x8c   : > { %1507 = dma.hbm_to_vmem [thread:$0]  (!%p1956_p0), %s2088_s11, 128, %s2092_s16, %s315_s18, %s1839_s15, %s1839_s15, %s1840_s8  }
  0x8d   : > { %p2349_p4 = scmp.ne.s32.totalorder %s2345_s17, 0 }
  0x8e   : > { %s2121_s29 = sand.u32 (!%p2349_p4), 1, %s1815_s19   ;;  %p2350_p8 = scmp.ne.s32.totalorder (!%p2349_p4), %s2335_s30, 0 }
  0x8f   : > { %340 = sbr.rel (%p2349_p4) target bundleno = 930 (0x3a2), region = 36  ;;  %s2124_s14 = sshll.u32 (!%p2349_p4), %s2121_s29, 5 }
  0x90   : > { %s343_s26 = scalar_lea.sflag (!%p2349_p4), [#allocation3], %s2121_s29  ;;  %s2128_s1 = scalar_lea.vmem (!%p2349_p4), [#allocation2], %s2124_s14 }
  0x96   : > { %1790 = dma.done.wait (%p2350_p8), %s343_s26, 512  }
  0x97   : > { %1792 = vsyncadd (%p2350_p8), %s343_s26, 4294966784  ;;  %s351_s9 = sand.u32 1, %s1908_s24   ;;  %s355_s17 = scalar_lea.vmem [#allocation5], %s2124_s14 }
  0x98   : > { %s352_s12 = scalar_lea.sflag [#allocation6], %s351_s9 }
  0x99   : > { %1794 = dma.done.wait (%p2350_p8), %s352_s12, 1024  }
  0x9a   : > { %1796 = vsyncadd (%p2350_p8), %s352_s12, 4294966272  ;;  %s1389_s11 = sshll.u32 %s2121_s29, 3  ;;  %s2142_s16 = scalar_lea.vmem [#allocation7], %s2124_s14 }
  0x9b   : > { %s370_s18 = scalar_lea.sflag [#allocation9], %s2121_s29  ;;  %s2145_s27 = scalar_lea.vmem [#allocation8], %s1389_s11 }
  0x9c   : > { %1798 = dma.done.wait (%p2350_p8), %s370_s18, 128  }
  0x9d   : > { %1800 = vsyncadd (%p2350_p8), %s370_s18, 4294967168  ;;  %v1841_v0 = vmov 0.0   ;;  %vm1842_vm0 = vmmov 0   ;;  %vm442_vm1 = vcmask 523264   ;;  %v430_v1 = vld [vmem:[%s355_s17] sm:$0xff]  ;;  %v431_v3 = vld [vmem:[%s355_s17 + $0x8] sm:$0xff] }
  0x9e   : > { %1442 = vmatprep.subr.mxu0 %v1841_v0  ;;  %1444 = vmatprep.mubr.msk.f32.mxu0 %vm1842_vm0, %v1841_v0  ;;  %v426_v2 = vld [vmem:[%s2128_s1] sm:$0xff]  ;;  %v427_v5 = vld [vmem:[%s2128_s1 + $0x8] sm:$0xff]  ;;  %v428_v6 = vld [vmem:[%s2128_s1 + $0x10] sm:$0xff]  ;;  %vm767_vm4 = vcmask 64512   ;;  %s419_s24 = scalar_lea.vmem [#allocation11], %s2124_s14  ;;  %s1416_s30 = sshll.u32 %s1823_s21, 9 }
  0x9f   : > { %1447 = vmatprep.subr.mxu1 %v1841_v0  ;;  %1449 = vmatprep.mubr.msk.f32.mxu1 %vm1842_vm0, %v1841_v0  ;;  %v438_v4 = vmul.f32 0.125, %v426_v2  ;;  %v432_v7 = vld [vmem:[%s355_s17 + $0x10] sm:$0xff]  ;;  %v439_v8 = vmul.f32 0.125, %v427_v5  ;;  %v429_v9 = vld [vmem:[%s2128_s1 + $0x18] sm:$0xff]  ;;  %v440_v11 = vmul.f32 0.125, %v428_v6  ;;  %v1419_v13 = vld [vmem:[%s2145_s27] sm:$0xff]   ;;  %s2215_s23 = scalar_lea.hbm %s2315_s5, %s1416_s30 }
  0xa0   : > { %1443 = vmatpush3.xpose.msk.msra.mxu0 %vm442_vm1, %v430_v1  ;;  %1448 = vmatpush3.xpose.msk.msra.mxu1 %vm442_vm1, %v431_v3  ;;  %v433_v10 = vld [vmem:[%s355_s17 + $0x18] sm:$0xff]  ;;  %v441_v12 = vmul.f32 0.125, %v429_v9  ;;  %v1420_v14 = vunpack.c.0.s8 %v1419_v13  ;;  %v1421_v15 = vunpack.c.1.s8 %v1419_v13  ;;  %v1424_v18 = vunpack.c.2.s8 %v1419_v13  ;;  %v434_v58 = vld [vmem:[%s2142_s16] sm:$0xff]  ;;  %v435_v59 = vld [vmem:[%s2142_s16 + $0x8] sm:$0xff]  ;;  %s1165_s25 = sshll.u32 %s419_s24, 4  ;;  %s1130_s13 = scalar_lea.sflag [#allocation12], %s2121_s29  ;;  %s2217_s25 = int_to_ptr.vmem [resolvable:$true] %s1165_s25 }
  0xa1   : > { %1452 = vmatprep.subr.mxu0 %v1841_v0  ;;  %1457 = vmatprep.subr.mxu1 %v1841_v0  ;;  %v1425_v19 = vunpack.c.3.s8 %v1419_v13  ;;  %s1709_s10 = scalar_lea.vmem %s2217_s25, 512  ;;  %p2351_p1 = scmp.ne.s32.totalorder %s2336_s6, 0 }
  0xa2   : > { %v755_v16 = vcvt.s32.f32 %v1420_v14  ;;  %v756_v17 = vcvt.s32.f32 %v1421_v15  ;;  %v757_v20 = vcvt.s32.f32 %v1424_v18  ;;  %p1710_p0 = scmp.ne.s32.totalorder %s2217_s25, %s1709_s10  ;;  %s1843_s28 = smov [#allocation11]  }
  0xa3   : > { %1445 = vmatmul.mubr.msk.f32.vlgmr.msra.gmra.mrb[0].mxu0 %vm442_vm1, %v438_v4  ;;  %1450 = vmatmul.mubr.msk.f32.vlgmr.msra.gmra.mrb[0].mxu1 %vm442_vm1, %v439_v8  ;;  %v758_v21 = vcvt.s32.f32 %v1425_v19  ;;  %v437_v19 = vld [vmem:[%s2142_s16 + $0x18] sm:$0xff]  ;;  %s1713_s0 = sshll.u32 %s1843_s28, 4  ;;  %s1714_s0 = int_to_ptr.vmem [resolvable:$false] %s1713_s0 }
  0xa4   : > { %1453 = vmatpush3.xpose.msk.msra.mxu0 %vm442_vm1, %v432_v7  ;;  %1454 = vmatprep.mubr.msk.f32.mxu0 %vm1842_vm0, %v1841_v0  ;;  %vm759_vm2 = vcmp.ne.f32.partialorder %v755_v16, 0.0  ;;  %vm760_vm3 = vcmp.ne.f32.partialorder %v756_v17, 0.0  ;;  %vm761_vm5 = vcmp.ne.f32.partialorder %v757_v20, 0.0  ;;  %p1711_p6 = pnand %p1710_p0, %p2351_p1  ;;  %s1715_s15 = scalar_lea.vmem %s1714_s0, 1024 }
  0xa5   : > { %1458 = vmatpush3.xpose.msk.msra.mxu1 %vm442_vm1, %v433_v10  ;;  %1459 = vmatprep.mubr.msk.f32.mxu1 %vm1842_vm0, %v1841_v0  ;;  %vm762_vm6 = vcmp.ne.f32.partialorder %v758_v21, 0.0  ;;  %p1716_p11 = scmp.lt.s32.totalorder %s2217_s25, %s1714_s0  ;;  %p1717_p2 = scmp.lt.s32.totalorder %s1715_s15, %s1709_s10 }
  0xa6   : > { %1462 = vmatprep.subr.mxu0 %v1841_v0  ;;  %1467 = vmatprep.subr.mxu1 %v1841_v0  ;;  %p1712_p13 = pneg %p1711_p6 }
  0xa7   : > { %1455 = vmatmul.mubr.msk.f32.vlgmr.msra.gmra.mrb[2].mxu0 %vm442_vm1, %v440_v11  ;;  %v436_v11 = vld [vmem:[%s2142_s16 + $0x10] sm:$0xff]  ;;  %p1718_p5 = por %p1717_p2, %p1716_p11 }
  0xa8   : > { %1460 = vmatmul.mubr.msk.f32.vlgmr.msra.gmra.mrb[2].mxu1 %vm442_vm1, %v441_v12  ;;  %1464 = vmatprep.mubr.msk.f32.mxu0 %vm1842_vm0, %v1841_v0 }
  0xa9   : > { %1469 = vmatprep.mubr.msk.f32.mxu1 %vm1842_vm0, %v1841_v0  ;;  %1463 = vmatpush3.msra.mxu0 %v434_v58  ;;  %p1719_p7 = pnand %p1718_p5, %p1712_p13 }
  0xaa   : > { %1472 = vmatprep.subr.mxu0 %v1841_v0  ;;  %1468 = vmatpush3.msra.mxu1 %v435_v59 }
  0xab   : > { %1477 = vmatprep.subr.mxu1 %v1841_v0 }
 0x176   : > { %v515_v22 = vpop.f32.mrb[0].mxu0  ;;  %v591_v23 = vpop.f32.mrb[0].mxu1 }
 0x177   : > { %v763_v24 = vsel %vm759_vm2, -1e+09, %v515_v22  ;;  %v1446_v25 = vpop.f32.mrb[1].mxu0  ;;  %v764_v26 = vsel %vm760_vm3, -1e+09, %v591_v23  ;;  %v1451_v27 = vpop.f32.mrb[1].mxu1 }
 0x178   : > { %v768_v28 = vsel %vm767_vm4, %v763_v24, -inf  ;;  %v771_v30 = vsel %vm767_vm4, %v764_v26, -inf }
 0x179   : > { %769 = vmax.xlane.f32.xlu0 %v768_v28 }
 0x17a   : > { %v667_v29 = vpop.f32.mrb[2].mxu0 }
 0x17b   : > { %v765_v31 = vsel %vm761_vm5, -1e+09, %v667_v29  ;;  %v1456_v32 = vpop.f32.mrb[3].mxu0  ;;  %v743_v33 = vpop.f32.mrb[2].mxu1 }
 0x17c   : > { %v774_v34 = vsel %vm767_vm4, %v765_v31, -inf  ;;  %v766_v35 = vsel %vm762_vm6, -1e+09, %v743_v33  ;;  %v1461_v36 = vpop.f32.mrb[3].mxu1 }
 0x17d   : > { %772 = vmax.xlane.f32.xlu0 %v771_v30  ;;  %775 = vmax.xlane.f32.xlu1 %v774_v34  ;;  %v777_v37 = vsel %vm767_vm4, %v766_v35, -inf }
 0x181   : > { %778 = vmax.xlane.f32.xlu1 %v777_v37 }
 0x206   : > { %v770_v38 = vpop.xlane.xlu0 %769 }
 0x207   : > { %v780_v39 = vsub.f32 %v763_v24, %v770_v38 }
 0x209   : > { %v784_v40 = vmul.f32 1.442695, %v780_v39 }
 0x20a   : > { %v773_v41 = vpop.xlane.xlu0 %772  ;;  %v776_v42 = vpop.xlane.xlu1 %775 }
 0x20b   : > { %1573 = vpow2.f32 %v784_v40  ;;  %v781_v43 = vsub.f32 %v764_v26, %v773_v41  ;;  %v782_v44 = vsub.f32 %v765_v31, %v776_v42 }
 0x20d   : > { %v786_v45 = vmul.f32 1.442695, %v781_v43  ;;  %v788_v46 = vmul.f32 1.442695, %v782_v44 }
 0x20e   : > { %v779_v47 = vpop.xlane.xlu1 %778 }
 0x20f   : > { %1575 = vpow2.f32 %v786_v45  ;;  %v783_v48 = vsub.f32 %v766_v35, %v779_v47 }
 0x210   : > { %1577 = vpow2.f32 %v788_v46 }
 0x211   : > { %v790_v49 = vmul.f32 1.442695, %v783_v48 }
 0x213   : > { %1579 = vpow2.f32 %v790_v49 }
 0x215   : > { %v1574_v50 = vpop.eup %1573 }
 0x216   : > { %v792_v51 = vsel %vm767_vm4, %v1574_v50, 0.0 }
 0x217   : > { %793 = vadd.xlane.f32.xlu0 %v792_v51 }
 0x219   : > { %v1576_v52 = vpop.eup %1575 }
 0x21a   : > { %v1578_v53 = vpop.eup %1577  ;;  %v795_v54 = vsel %vm767_vm4, %v1576_v52, 0.0 }
 0x21b   : > { %796 = vadd.xlane.f32.xlu1 %v795_v54  ;;  %v798_v55 = vsel %vm767_vm4, %v1578_v53, 0.0 }
 0x21c   : > { %799 = vadd.xlane.f32.xlu0 %v798_v55 }
 0x21d   : > { %v1580_v56 = vpop.eup %1579 }
 0x21e   : > { %v801_v57 = vsel %vm767_vm4, %v1580_v56, 0.0 }
 0x21f   : > { %802 = vadd.xlane.f32.xlu1 %v801_v57 }
 0x2a4   : > { %v794_v60 = vpop.xlane.xlu0 %793 }
 0x2a5   : > { %1581 = vrcp.f32 %v794_v60 }
 0x2a8   : > { %v797_v61 = vpop.xlane.xlu1 %796 }
 0x2a9   : > { %v800_v62 = vpop.xlane.xlu0 %799  ;;  %1583 = vrcp.f32 %v797_v61 }
 0x2aa   : > { %1585 = vrcp.f32 %v800_v62 }
 0x2ac   : > { %v803_v63 = vpop.xlane.xlu1 %802 }
 0x2ad   : > { %1587 = vrcp.f32 %v803_v63 }
 0x2af   : > { %v1582_v1 = vpop.eup %1581 }
 0x2b0   : > { %v808_v2 = vmul.f32 %v1582_v1, %v794_v60 }
 0x2b2   : > { %v812_v3 = vsub.f32 2.0, %v808_v2 }
 0x2b3   : > { %v1584_v4 = vpop.eup %1583 }
 0x2b4   : > { %v1586_v5 = vpop.eup %1585  ;;  %v816_v6 = vmul.f32 %v1582_v1, %v812_v3  ;;  %v809_v7 = vmul.f32 %v1584_v4, %v797_v61 }
 0x2b5   : > { %v810_v8 = vmul.f32 %v1586_v5, %v800_v62 }
 0x2b6   : > { %v820_v9 = vmul.f32 %v1574_v50, %v816_v6  ;;  %v813_v10 = vsub.f32 2.0, %v809_v7 }
 0x2b7   : > { %v1588_v12 = vpop.eup %1587  ;;  %v814_v13 = vsub.f32 2.0, %v810_v8 }
 0x2b8   : > { %1116 = vst.msk [vmem:[%s419_s24] sm:$0xff] %vm767_vm4, %v820_v9  ;;  %v817_v14 = vmul.f32 %v1584_v4, %v813_v10  ;;  %v811_v15 = vmul.f32 %v1588_v12, %v803_v63  ;;  %1465 = vmatmul.mubr.msk.f32.vlgmr.msra.gmra.mrb[4].mxu0 %vm767_vm4, %v820_v9 }
 0x2b9   : > { %v818_v16 = vmul.f32 %v1586_v5, %v814_v13  ;;  %1473 = vmatpush3.msra.mxu0 %v436_v11  ;;  %1474 = vmatprep.mubr.msk.f32.mxu0 %vm1842_vm0, %v1841_v0 }
 0x2ba   : > { %v821_v17 = vmul.f32 %v1576_v52, %v817_v14  ;;  %v815_v18 = vsub.f32 2.0, %v811_v15 }
 0x2bb   : > { %v822_v20 = vmul.f32 %v1578_v53, %v818_v16 }
 0x2bc   : > { %1117 = vst.msk [vmem:[%s419_s24 + $0x8] sm:$0xff] %vm767_vm4, %v821_v17  ;;  %v819_v21 = vmul.f32 %v1588_v12, %v815_v18  ;;  %1470 = vmatmul.mubr.msk.f32.vlgmr.msra.gmra.mrb[4].mxu1 %vm767_vm4, %v821_v17 }
 0x2bd   : > { %1118 = vst.msk [vmem:[%s419_s24 + $0x10] sm:$0xff] %vm767_vm4, %v822_v20  ;;  %1475 = vmatmul.mubr.msk.f32.vlgmr.msra.gmra.mrb[6].mxu0 %vm767_vm4, %v822_v20  ;;  %1478 = vmatpush3.msra.mxu1 %v437_v19 }
 0x2be   : > { %v823_v22 = vmul.f32 %v1580_v56, %v819_v21  ;;  %1479 = vmatprep.mubr.msk.f32.mxu1 %vm1842_vm0, %v1841_v0 }
 0x2c0   : > { %1119 = vst.msk [vmem:[%s419_s24 + $0x18] sm:$0xff] %vm767_vm4, %v823_v22  ;;  %1480 = vmatmul.mubr.msk.f32.vlgmr.msra.gmra.mrb[6].mxu1 %vm767_vm4, %v823_v22 }
 0x2c1   : > { %1722 = shalt.err (!%p1719_p7)
}
 0x2c2   : > { %s1723_s8 = scalar_lea.hbm %s2215_s23, 512  ;;  %s1727_s9 = scalar_lea.hbm %s2315_s5, 1024 }
 0x2c3   : > { %p1724_p3 = scmp.ne.s32.totalorder %s2215_s23, %s1723_s8  ;;  %p1728_p12 = scmp.lt.u32.totalorder %s2215_s23, %s2315_s5 }
 0x2c4   : > { %p1729_p4 = scmp.lt.u32.totalorder %s1727_s9, %s1723_s8  ;;  %p1731_p0 = scmp.lt.u32.totalorder %s1723_s8, %s2215_s23 }
 0x2c5   : > { %p1725_p10 = pnand %p1724_p3, %p2351_p1 }
 0x2c6   : > { %p1730_p8 = por %p1729_p4, %p1728_p12 }
 0x2c7   : > { %p1726_p9 = pneg %p1725_p10 }
 0x2c8   : > { %p1732_p6 = por %p1731_p0, %p1730_p8 }
 0x2ca   : > { %p1733_p13 = pnand %p1732_p6, %p1726_p9 }
 0x2cc   : > { %1736 = shalt.err (!%p1733_p13)
}
 0x2cd   : > { %s1844_s11 = smov 128   ;;  %s1845_s16 = smov 8  }
 0x2ce   : > { %1492 = dma.vmem_to_hbm [thread:$0]  (%p2351_p1), %s2217_s25, 512, %s2215_s23, %s1130_s13, %s1844_s11, %s1844_s11, %s1845_s16  }
 0x2cf   : > { %s412_s18 = scalar_lea.vmem [#allocation10], %s2124_s14  ;;  %s2257_s7 = scalar_lea.hbm %s2314_s4, %s1416_s30 }
 0x2d0   : > { %s1146_s27 = sshll.u32 %s412_s18, 4  ;;  %s1125_s20 = scalar_lea.sflag [#allocation4], %s2121_s29  ;;  %s2249_s27 = int_to_ptr.vmem [resolvable:$true] %s1146_s27 }
 0x2d1   : > { %s1737_s23 = scalar_lea.vmem %s2249_s27, 512  ;;  %s1846_s25 = smov [#allocation10]  }
 0x2d2   : > { %p1738_p11 = scmp.ne.s32.totalorder %s2249_s27, %s1737_s23  ;;  %s1741_s13 = sshll.u32 %s1846_s25, 4  ;;  %s1742_s13 = int_to_ptr.vmem [resolvable:$false] %s1741_s13 }
 0x2d3   : > { %s1743_s10 = scalar_lea.vmem %s1742_s13, 1024  ;;  %p1744_p7 = scmp.lt.s32.totalorder %s2249_s27, %s1742_s13 }
 0x2d4   : > { %p1739_p2 = pnand %p1738_p11, %p2351_p1  ;;  %p1745_p3 = scmp.lt.s32.totalorder %s1743_s10, %s1737_s23 }
 0x2d6   : > { %p1740_p5 = pneg %p1739_p2  ;;  %p1746_p10 = por %p1745_p3, %p1744_p7 }
 0x2d8   : > { %p1747_p9 = pnand %p1746_p10, %p1740_p5 }
 0x38b   : > { %v893_v0 = vpop.f32.mrb[4].mxu0 }
 0x38c   : > { %1120 = vst.msk [vmem:[%s412_s18] sm:$0xff] %vm442_vm1, %v893_v0  ;;  %v1466_v23 = vpop.f32.mrb[5].mxu0 }
 0x38f   : > { %v966_v24 = vpop.f32.mrb[4].mxu1 }
 0x390   : > { %1121 = vst.msk [vmem:[%s412_s18 + $0x8] sm:$0xff] %vm442_vm1, %v966_v24  ;;  %v1039_v25 = vpop.f32.mrb[6].mxu0  ;;  %v1471_v26 = vpop.f32.mrb[5].mxu1 }
 0x391   : > { %1122 = vst.msk [vmem:[%s412_s18 + $0x10] sm:$0xff] %vm442_vm1, %v1039_v25  ;;  %v1476_v27 = vpop.f32.mrb[7].mxu0 }
 0x393   : > { %v1112_v28 = vpop.f32.mrb[6].mxu1 }
 0x394   : > { %1123 = vst.msk [vmem:[%s412_s18 + $0x18] sm:$0xff] %vm442_vm1, %v1112_v28  ;;  %v1481_v29 = vpop.f32.mrb[7].mxu1 }
 0x395   : > { %1750 = shalt.err (!%p1747_p9)
}
 0x396   : > { %s1751_s21 = scalar_lea.hbm %s2257_s7, 512  ;;  %s1755_s0 = scalar_lea.hbm %s2314_s4, 1024 }
 0x397   : > { %p1752_p12 = scmp.ne.s32.totalorder %s2257_s7, %s1751_s21  ;;  %p1756_p0 = scmp.lt.u32.totalorder %s2257_s7, %s2314_s4 }
 0x398   : > { %p1757_p6 = scmp.lt.u32.totalorder %s1755_s0, %s1751_s21  ;;  %p1759_p11 = scmp.lt.u32.totalorder %s1751_s21, %s2257_s7 }
 0x399   : > { %p1753_p4 = pnand %p1752_p12, %p2351_p1 }
 0x39a   : > { %p1758_p13 = por %p1757_p6, %p1756_p0 }
 0x39b   : > { %p1754_p8 = pneg %p1753_p4 }
 0x39c   : > { %p1760_p2 = por %p1759_p11, %p1758_p13 }
 0x39e   : > { %p1761_p5 = pnand %p1760_p2, %p1754_p8 }
 0x3a0   : > { %1764 = shalt.err (!%p1761_p5)
}
 0x3a1   : > { %1491 = dma.vmem_to_hbm [thread:$0]  (%p2351_p1), %s2249_s27, 512, %s2257_s7, %s1125_s20, %s1844_s11, %s1844_s11, %s1845_s16  }
 0x3a2 PF: > { %s2352_s26 = sld [smem:[#allocation18_spill]]  ;;  %s2353_s1 = sld [smem:[#allocation23_spill]] }
 0x3a3   : > { %s2354_s9 = sld [smem:[#allocation20_spill]] }
 0x3a8   : > { %s1180_s12 = sand.u32 1, %s2352_s26   ;;  %p2355_p7 = scmp.ne.s32.totalorder %s2353_s1, 0 }
 0x3a9   : > { %p2356_p3 = scmp.ge.s32.totalorder %s2354_s9, 2  ;;  %s1181_s17 = scalar_lea.sflag [#allocation4], %s1180_s12 }
 0x3ab   : > { %p1509_p10 = pnand %p2356_p3, %p2355_p7 }
 0x3ad   : > { %1802 = dma.done.wait (!%p1509_p10), %s1181_s17, 512  }
 0x3ae   : > { %1804 = vsyncadd (!%p1509_p10), %s1181_s17, 4294966784  ;;  %s1190_s6 = scalar_lea.sflag [#allocation12], %s1180_s12 }
 0x3af   : > { %1806 = dma.done.wait (!%p1509_p10), %s1190_s6, 512  }
 0x3b0   : > { %1808 = vsyncadd (!%p1509_p10), %s1190_s6, 4294966784  ;;  %s31_s23 = sadd.s32 1, %s2354_s9   ;;  %s2357_s29 = sld [smem:[#allocation19_spill]] }
 0x3b1   : > { %p28_p9 = scmp.ge.s32.totalorder %s31_s23, 4   ;;  %s2358_s20 = sld [smem:[#allocation22_spill]] }
 0x3b2   : > { %s2359_s11 = sld [smem:[#allocation21_spill]]  ;;  %s2360_s18 = smov %s1815_s19 }
 0x3b3   : > { %s2362_s21 = smov %s1827_s22  ;;  %30 = sbr.rel (!%p28_p9) target bundleno = 15 (0xf), region = 135 }
 0x3b6   : > { %s2361_s19 = smov %s2357_s29 }
 0x3b8   : > { %s2363_s22 = smov %s2359_s11 }
 0x3ba   :  { %1195 = vsyncpa [#allocation3], 1 }
 0x3bb   :  { %1197 = vsyncpa [#allocation3 + $0x1], 1 }
 0x3bc   :  { %1198 = vsyncpa [#allocation6], 1 }
 0x3bd   :  { %1200 = vsyncpa [#allocation6 + $0x1], 1 }
 0x3be   :  { %1201 = vsyncpa [#allocation9], 1 }
 0x3bf   :  { %1203 = vsyncpa [#allocation9 + $0x1], 1 }
 0x3c0   :  { %1204 = vsyncpa [#allocation4], 1 }
 0x3c1   :  { %1206 = vsyncpa [#allocation4 + $0x1], 1 }
 0x3c2   :  { %1207 = vsyncpa [#allocation12], 1 }
 0x3c3   :  { %1209 = vsyncpa [#allocation12 + $0x1], 1 }

</bundles_post_ra>
